<compile_context>
chip_gen: v7x
topology: tpu7x:2x2x1
jax: 0.10.0
libtpu: 0.0.40
codegen_flags: <defaults>
</compile_context>

<pallas_src>
import math
from functools import partial

import jax
import jax.numpy as jnp
from jax import lax
from jax.experimental import pallas as pl
from jax.experimental.pallas import tpu as pltpu


# ----------------------------------------------------------------------------
# helpers
# ----------------------------------------------------------------------------
def _round_up(x, m):
    return ((x + m - 1) // m) * m


def _pick_tile(dim, target, granule):
    """Largest divisor of `dim` that is <= target and a multiple of `granule`.
    Falls back to the full dimension (legal: block dim == array dim)."""
    if dim <= target:
        return dim
    t = (target // granule) * granule
    for cand in range(t, 0, -granule):
        if dim % cand == 0:
            return cand
    # TODO(synk): pad + masked tail instead of a full-dim block for awkward dims.
    return dim


def _heads_per_block(num_heads, d_k):
    """Group heads so the block's last dim (lanes) is >= 128 when possible."""
    d_model = num_heads * d_k
    if d_model <= 128:
        return num_heads                      # whole d_model in one block
    g = 128 // math.gcd(d_k, 128)             # smallest g with g*d_k % 128 == 0
    if num_heads % g == 0:
        return g
    return num_heads                          # fallback: full d_model block


def _linear_vmem_limit(tm, tn, tk, bpe=2):
    per_step = (tm * tk + tk * tn + tm * tn) * bpe
    acc = tm * tn * 4
    est = 2 * per_step + acc                  # double-buffered pipeline + acc
    return int(min(max(2 * est + (4 << 20), 32 << 20), 48 << 20))


def _sdpa_vmem_limit(tq, tk, hb, G, d_k, has_mask, bpe=2):
    hb_p = _round_up(hb, 128)
    per_step = (_round_up(tq, 8) * hb_p          # q
                + 2 * _round_up(tk, 8) * hb_p    # k, v
                + _round_up(tq, 8) * hb_p) * bpe  # o
    if has_mask:
        per_step += 8 * _round_up(tk, 128) * 4
    scratch = (2 * G * _round_up(tq, 8) * 128            # m, l (lane-padded)
               + G * _round_up(tq, 8) * _round_up(d_k, 128)) * 4  # acc
    est = 2 * per_step + scratch
    return int(min(max(2 * est + (8 << 20), 32 << 20), 48 << 20))


# ----------------------------------------------------------------------------
# Kernel 1: tiled linear projection  y = x @ w_t   (w_t = W.T, shape (Din,Dout))
# ----------------------------------------------------------------------------
def _linear_kernel(x_ref, w_ref, o_ref, acc_ref):
    @pl.when(pl.program_id(2) == 0)
    def _init():
        acc_ref[...] = jnp.zeros_like(acc_ref)

    acc_ref[...] += jnp.dot(x_ref[...], w_ref[...],
                            preferred_element_type=jnp.float32)

    @pl.when(pl.program_id(2) == pl.num_programs(2) - 1)
    def _store():
        o_ref[...] = acc_ref[...].astype(o_ref.dtype)


def linear(x, w_t, *, out_dtype=None, tm=512, tn=512, tk=512):
    """y = x @ w_t with a pipelined, tiled Pallas matmul (f32 accumulation).
    w_t must already be (Din, Dout) — canonical MXU layout, no in-kernel
    transposes."""
    M, Din = x.shape
    Din2, Dout = w_t.shape
    assert Din == Din2
    out_dtype = out_dtype if out_dtype is not None else x.dtype

    tm = _pick_tile(M, tm, 8)
    tn = _pick_tile(Dout, tn, 128)
    tk = _pick_tile(Din, tk, 128)
    grid = (M // tm, Dout // tn, Din // tk)

    return pl.pallas_call(
        _linear_kernel,
        out_shape=jax.ShapeDtypeStruct((M, Dout), out_dtype),
        grid_spec=pltpu.PrefetchScalarGridSpec(
            num_scalar_prefetch=0,
            grid=grid,
            in_specs=[
                pl.BlockSpec((tm, tk), lambda i, j, k: (i, k)),
                pl.BlockSpec((tk, tn), lambda i, j, k: (k, j)),
            ],
            out_specs=pl.BlockSpec((tm, tn), lambda i, j, k: (i, j)),
            scratch_shapes=[pltpu.VMEM((tm, tn), jnp.float32)],
        ),
        compiler_params=pltpu.CompilerParams(
            dimension_semantics=("parallel", "parallel", "arbitrary"),
            vmem_limit_bytes=_linear_vmem_limit(tm, tn, tk)),
    )(x, w_t)


# ----------------------------------------------------------------------------
# Kernel 2: flash-style scaled dot-product attention.
#   grid = (batch, head_groups, q_tiles, k_tiles); key axis innermost,
#   "arbitrary", with online-softmax state (m, l, acc) in VMEM scratch.
#   Head split/merge happens purely via BlockSpec indexing of the d_model axis.
# ----------------------------------------------------------------------------
def _flash_attention_kernel(*refs, d_k, heads_per_block, mask_future, has_mask,
                            scale):
    if has_mask:
        q_ref, k_ref, v_ref, mask_ref, o_ref, m_sc, l_sc, acc_sc = refs
    else:
        q_ref, k_ref, v_ref, o_ref, m_sc, l_sc, acc_sc = refs
        mask_ref = None

    j = pl.program_id(3)

    @pl.when(j == 0)
    def _init():
        m_sc[...] = jnp.full_like(m_sc, -jnp.inf)
        l_sc[...] = jnp.zeros_like(l_sc)
        acc_sc[...] = jnp.zeros_like(acc_sc)

    # Fold 1/sqrt(d_k) into q: a (tq, hb) multiply instead of (tq, Sk) per head.
    q = q_ref[0] * scale            # (tq, G*d_k)
    k = k_ref[0]                    # (tk, G*d_k)
    v = v_ref[0]                    # (tk, G*d_k)
    tq = q.shape[0]
    tk = k.shape[0]

    # Build the combined keep-mask ONCE per block (hoisted out of the head loop;
    # JAX does not CSE broadcast_in_dim).
    need_mask = has_mask or mask_future
    if need_mask:
        if mask_future:
            q_start = pl.program_id(2) * tq
            k_start = j * tk
            row = lax.broadcasted_iota(jnp.int32, (tq, tk), 0) + q_start
            col = lax.broadcasted_iota(jnp.int32, (tq, tk), 1) + k_start
            keep = col <= row
            if has_mask:
                keep = jnp.logical_and(
                    keep, jnp.broadcast_to(mask_ref[0] != 0, (tq, tk)))
        else:
            keep = jnp.broadcast_to(mask_ref[0] != 0, (tq, tk))

    neg = jnp.float32(-10000.0)     # matches the PyTorch masked_fill value

    for g in range(heads_per_block):
        lo = g * d_k
        q_h = q[:, lo:lo + d_k]     # (tq, d_k)
        k_h = k[:, lo:lo + d_k]     # (tk, d_k)
        v_h = v[:, lo:lo + d_k]     # (tk, d_k)

        # scores = q_h @ k_h.T expressed as a contraction (no XLU transpose)
        s = lax.dot_general(
            q_h, k_h,
            dimension_numbers=(((1,), (1,)), ((), ())),
            preferred_element_type=jnp.float32)                 # (tq, tk) f32
        if need_mask:
            s = jnp.where(keep, s, neg)

        # online softmax update
        m_prev = m_sc[g]                                        # (tq, 1)
        m_new = jnp.maximum(m_prev, jnp.max(s, axis=-1, keepdims=True))
        alpha = jnp.exp(m_prev - m_new)
        p = jnp.exp(s - m_new)
        l_sc[g] = alpha * l_sc[g] + jnp.sum(p, axis=-1, keepdims=True)
        acc_sc[g] = alpha * acc_sc[g] + jnp.dot(
            p.astype(v_h.dtype), v_h, preferred_element_type=jnp.float32)
        m_sc[g] = m_new

    @pl.when(j == pl.num_programs(3) - 1)
    def _finalize():
        outs = []
        for g in range(heads_per_block):
            inv_l = pl.reciprocal(l_sc[g], approx=True)         # EUP divide
            outs.append((acc_sc[g] * inv_l).astype(o_ref.dtype))
        # one lane-dense store of the whole head-group block
        o_ref[0] = jnp.concatenate(outs, axis=-1)


def sdpa(q, k, v, mask=None, *, num_heads, mask_future,
         tq_target=256, tk_target=512):
    """q/k/v: (B, S, D) with heads laid out contiguously along D.
    mask: optional (B, Sk) padding mask (1 = keep)."""
    B, Sq, D = q.shape
    _, Sk, _ = k.shape
    d_k = D // num_heads
    G = _heads_per_block(num_heads, d_k)
    hb = G * d_k                                   # block width along D
    # TODO(synk): drop tq_target to 128 on v5e (128-wide MXU, fewer vregs).
    tq = _pick_tile(Sq, tq_target, 8)
    tk = _pick_tile(Sk, tk_target, 128)            # flash key chunk
    grid = (B, num_heads // G, Sq // tq, Sk // tk)
    has_mask = mask is not None

    kern = partial(_flash_attention_kernel, d_k=d_k, heads_per_block=G,
                   mask_future=mask_future, has_mask=has_mask,
                   scale=1.0 / math.sqrt(d_k))

    in_specs = [
        pl.BlockSpec((1, tq, hb), lambda b, h, i, j: (b, i, h)),
        pl.BlockSpec((1, tk, hb), lambda b, h, i, j: (b, j, h)),
        pl.BlockSpec((1, tk, hb), lambda b, h, i, j: (b, j, h)),
    ]
    inputs = [q, k, v]
    if has_mask:
        # padding mask kept as (B, 1, Sk): NOT replicated per head.
        mask3 = mask.astype(jnp.int32).reshape(B, 1, Sk)
        in_specs.append(pl.BlockSpec((1, 1, tk), lambda b, h, i, j: (b, 0, j)))
        inputs.append(mask3)

    scratch = [
        pltpu.VMEM((G, tq, 1), jnp.float32),       # m (running max)
        pltpu.VMEM((G, tq, 1), jnp.float32),       # l (running denom)
        pltpu.VMEM((G, tq, d_k), jnp.float32),     # acc (running numerator)
    ]

    return pl.pallas_call(
        kern,
        out_shape=jax.ShapeDtypeStruct((B, Sq, D), q.dtype),
        grid_spec=pltpu.PrefetchScalarGridSpec(
            num_scalar_prefetch=0,
            grid=grid,
            in_specs=in_specs,
            out_specs=pl.BlockSpec((1, tq, hb), lambda b, h, i, j: (b, i, h)),
            scratch_shapes=scratch,
        ),
        compiler_params=pltpu.CompilerParams(
            # key-reduction axis last + "arbitrary"; independent axes parallel
            # (leading B axis lets v7x shard across its 2 TensorCores).
            dimension_semantics=("parallel", "parallel", "parallel",
                                 "arbitrary"),
            vmem_limit_bytes=_sdpa_vmem_limit(tq, tk, hb, G, d_k, has_mask)),
    )(*inputs)


# ----------------------------------------------------------------------------
# Parameter prep (done ONCE, not per forward): transpose weights to (Din, Dout)
# and pre-concatenate the fused QKV weight.
# ----------------------------------------------------------------------------
def prepare_params(params, compute_dtype=jnp.bfloat16):
    wq, wk, wv, wo = params["wq"], params["wk"], params["wv"], params["wo"]
    return {
        "wq_t": wq.T.astype(compute_dtype),
        "wk_t": wk.T.astype(compute_dtype),
        "wv_t": wv.T.astype(compute_dtype),
        "wo_t": wo.T.astype(compute_dtype),
        "wqkv_t": jnp.concatenate(
            [wq.T, wk.T, wv.T], axis=1).astype(compute_dtype),   # (Din, 3D)
    }


# ----------------------------------------------------------------------------
# MultiHeadAttention forward (glue in plain JAX, hot path in Pallas).
# ----------------------------------------------------------------------------
def multi_head_attention(prepared, query, key, value, mask=None, *,
                         num_heads, mask_future=False,
                         compute_dtype=jnp.bfloat16):
    B, Sq, D = query.shape
    Sk = key.shape[1]
    Sv = value.shape[1]
    out_dtype = query.dtype

    xq = query.astype(compute_dtype).reshape(B * Sq, D)

    if (query is key) and (key is value):
        # self-attention: fused QKV projection — read activations once.
        qkv = linear(xq, prepared["wqkv_t"], out_dtype=compute_dtype)
        q2, k2, v2 = jnp.split(qkv, 3, axis=-1)
        q = q2.reshape(B, Sq, D)
        k = k2.reshape(B, Sk, D)
        v = v2.reshape(B, Sv, D)
    else:
        xk = key.astype(compute_dtype).reshape(B * Sk, D)
        xv = value.astype(compute_dtype).reshape(B * Sv, D)
        q = linear(xq, prepared["wq_t"], out_dtype=compute_dtype).reshape(B, Sq, D)
        k = linear(xk, prepared["wk_t"], out_dtype=compute_dtype).reshape(B, Sk, D)
        v = linear(xv, prepared["wv_t"], out_dtype=compute_dtype).reshape(B, Sv, D)

    # head split/merge handled inside sdpa's BlockSpecs — no transposes here.
    attn = sdpa(q, k, v, mask, num_heads=num_heads,
                mask_future=mask_future)                         # (B, Sq, D)

    out = linear(attn.reshape(B * Sq, D), prepared["wo_t"],
                 out_dtype=out_dtype).reshape(B, Sq, D)
    return out


# ----------------------------------------------------------------------------
# Pure-JAX f32 reference (mirrors the PyTorch module exactly).
# ----------------------------------------------------------------------------
def reference_mha(params, query, key, value, mask=None, *, num_heads,
                  mask_future=False):
    wq, wk, wv, wo = params["wq"], params["wk"], params["wv"], params["wo"]
    B, Sq, D = query.shape
    Sk = key.shape[1]
    d_k = D // num_heads

    q = query @ wq.T
    k = key @ wk.T
    v = value @ wv.T
    q = q.reshape(B, Sq, num_heads, d_k).transpose(0, 2, 1, 3).reshape(B * num_heads, Sq, d_k)
    k = k.reshape(B, Sk, num_heads, d_k).transpose(0, 2, 1, 3).reshape(B * num_heads, Sk, d_k)
    v = v.reshape(B, Sk, num_heads, d_k).transpose(0, 2, 1, 3).reshape(B * num_heads, Sk, d_k)

    scores = q @ jnp.swapaxes(k, -1, -2) / math.sqrt(d_k)
    if mask_future:
        fut = jnp.triu(jnp.ones((Sq, Sk)), k=1)
        scores = jnp.where(fut == 1, -10000.0, scores)
    if mask is not None:
        pm = jnp.broadcast_to(mask[:, None, :], (B, num_heads, Sk)).reshape(
            B * num_heads, 1, Sk)
        scores = jnp.where(pm == 0, -10000.0, scores)
    w = jax.nn.softmax(scores, axis=-1)
    attn = w @ v
    attn = attn.reshape(B, num_heads, Sq, d_k).transpose(0, 2, 1, 3).reshape(B, Sq, D)
    return attn @ wo.T


if __name__ == "__main__":
    # small shapes consistent with the module's forward
    B, S, D, H = 2, 8, 32, 4

    key0 = jax.random.PRNGKey(0)
    ks = jax.random.split(key0, 8)

    # nn.Linear(d_model, d_model, bias=False) -> weight shape (d_model, d_model)
    bound = 1.0 / math.sqrt(D)
    params = {
        "wq": jax.random.uniform(ks[0], (D, D), jnp.float32, -bound, bound),
        "wk": jax.random.uniform(ks[1], (D, D), jnp.float32, -bound, bound),
        "wv": jax.random.uniform(ks[2], (D, D), jnp.float32, -bound, bound),
        "wo": jax.random.uniform(ks[3], (D, D), jnp.float32, -bound, bound),
    }
    prepared = prepare_params(params)   # one-time transpose + QKV concat

    query = jax.random.normal(ks[4], (B, S, D), jnp.float32)
    key_x = jax.random.normal(ks[5], (B, S, D), jnp.float32)
    value = jax.random.normal(ks[6], (B, S, D), jnp.float32)
    # padding mask: last two key positions of batch 1 are padded
    mask = jnp.ones((B, S), dtype=jnp.int32).at[1, -2:].set(0)

    # case 1: cross-attention (separate q/k/v projections), padding mask only
    out1 = multi_head_attention(prepared, query, key_x, value, mask,
                                num_heads=H, mask_future=False)
    out1 = jax.block_until_ready(out1)
    ref1 = reference_mha(params, query, key_x, value, mask,
                         num_heads=H, mask_future=False)
    assert out1.shape == (B, S, D)
    assert jnp.allclose(out1, ref1, atol=2e-2, rtol=2e-2), \
        f"max err {jnp.max(jnp.abs(out1 - ref1))}"

    # case 2: self-attention (fused QKV projection) with causal + padding masks
    out2 = multi_head_attention(prepared, query, query, query, mask,
                                num_heads=H, mask_future=True)
    out2 = jax.block_until_ready(out2)
    ref2 = reference_mha(params, query, query, query, mask,
                         num_heads=H, mask_future=True)
    assert out2.shape == (B, S, D)
    assert jnp.allclose(out2, ref2, atol=2e-2, rtol=2e-2), \
        f"max err {jnp.max(jnp.abs(out2 - ref2))}"

    # case 3: no mask at all (exercises the static has_mask=False fast path)
    out3 = multi_head_attention(prepared, query, key_x, value, None,
                                num_heads=H, mask_future=False)
    out3 = jax.block_until_ready(out3)
    ref3 = reference_mha(params, query, key_x, value, None,
                         num_heads=H, mask_future=False)
    assert out3.shape == (B, S, D)
    assert jnp.allclose(out3, ref3, atol=2e-2, rtol=2e-2), \
        f"max err {jnp.max(jnp.abs(out3 - ref3))}"

    print("KERNEL_OK")
</pallas_src>

<mosaic_0001>
module attributes {stable_mosaic.version = 11 : i64} {
  func.func @_linear_kernel(%arg0: i32, %arg1: i32, %arg2: i32, %arg3: memref<16x32xbf16, #tpu.memory_space<vmem>>, %arg4: memref<32x32xbf16, #tpu.memory_space<vmem>>, %arg5: memref<16x32xbf16, #tpu.memory_space<vmem>>, %arg6: memref<16x32xf32, #tpu.memory_space<vmem>>) attributes {dimension_semantics = [#tpu.dimension_semantics<parallel>, #tpu.dimension_semantics<parallel>, #tpu.dimension_semantics<arbitrary>], iteration_bounds = array<i64: 1, 1, 1>, scalar_prefetch = 0 : i64, scratch_operands = 1 : i64, tpu.core_type = #tpu.core_type<tc>, window_params = [{transform_indices = @transform_0, window_bounds = array<i64: 16, 32>}, {transform_indices = @transform_1, window_bounds = array<i64: 32, 32>}, {transform_indices = @transform_2, window_bounds = array<i64: 16, 32>}]} {
    %c0_i32 = arith.constant 0 : i32
    %0 = arith.cmpi eq, %arg2, %c0_i32 : i32
    %1 = arith.extui %0 : i1 to i32
    %c0_i32_0 = arith.constant 0 : i32
    %2 = arith.cmpi ne, %1, %c0_i32_0 : i32
    scf.if %2 {
      %cst_10 = arith.constant 0.000000e+00 : f32
      %12 = vector.broadcast %cst_10 : f32 to vector<16x32xf32>
      %c0_11 = arith.constant 0 : index
      %c0_12 = arith.constant 0 : index
      %13 = vector.load %arg6[%c0_11, %c0_12] : memref<16x32xf32, #tpu.memory_space<vmem>>, vector<16x32xf32>
      tpu.vector_store %arg6[%c0_11, %c0_12], %12 {strides = array<i32>} : memref<16x32xf32, #tpu.memory_space<vmem>>, vector<16x32xf32>,
    } else {
    }
    %c0 = arith.constant 0 : index
    %c0_1 = arith.constant 0 : index
    %3 = vector.load %arg6[%c0, %c0_1] : memref<16x32xf32, #tpu.memory_space<vmem>>, vector<16x32xf32>
    %c0_2 = arith.constant 0 : index
    %c0_3 = arith.constant 0 : index
    %4 = vector.load %arg3[%c0_2, %c0_3] : memref<16x32xbf16, #tpu.memory_space<vmem>>, vector<16x32xbf16>
    %c0_4 = arith.constant 0 : index
    %c0_5 = arith.constant 0 : index
    %5 = vector.load %arg4[%c0_4, %c0_5] : memref<32x32xbf16, #tpu.memory_space<vmem>>, vector<32x32xbf16>
    %cst = arith.constant dense<0.000000e+00> : vector<16x32xf32>
    %6 = tpu.matmul %4, %5, %cst {dimension_numbers = #tpu.dot_dimension_numbers<[1], [0], [0], [1], [0, 0, 1, 1], [], []>} : vector<16x32xbf16>, vector<32x32xbf16>, vector<16x32xf32> -> vector<16x32xf32>
    %7 = arith.addf %3, %6 : vector<16x32xf32>
    %c0_6 = arith.constant 0 : index
    %c0_7 = arith.constant 0 : index
    %8 = vector.load %arg6[%c0_6, %c0_7] : memref<16x32xf32, #tpu.memory_space<vmem>>, vector<16x32xf32>
    tpu.vector_store %arg6[%c0_6, %c0_7], %7 {strides = array<i32>} : memref<16x32xf32, #tpu.memory_space<vmem>>, vector<16x32xf32>,
    %c0_i32_8 = arith.constant 0 : i32
    %9 = arith.cmpi eq, %arg2, %c0_i32_8 : i32
    %10 = arith.extui %9 : i1 to i32
    %c0_i32_9 = arith.constant 0 : i32
    %11 = arith.cmpi ne, %10, %c0_i32_9 : i32
    scf.if %11 {
      %c0_10 = arith.constant 0 : index
      %c0_11 = arith.constant 0 : index
      %12 = vector.load %arg6[%c0_10, %c0_11] : memref<16x32xf32, #tpu.memory_space<vmem>>, vector<16x32xf32>
      %13 = arith.truncf %12 : vector<16x32xf32> to vector<16x32xbf16>
      %c0_12 = arith.constant 0 : index
      %c0_13 = arith.constant 0 : index
      %14 = vector.load %arg5[%c0_12, %c0_13] : memref<16x32xbf16, #tpu.memory_space<vmem>>, vector<16x32xbf16>
      tpu.vector_store %arg5[%c0_12, %c0_13], %13 {strides = array<i32>} : memref<16x32xbf16, #tpu.memory_space<vmem>>, vector<16x32xbf16>,
    } else {
    }
    return
  }
  func.func @transform_0(%arg0: i32, %arg1: i32, %arg2: i32) -> (i32, i32) {
    %c0_i32 = arith.constant 0 : i32
    return %arg0, %arg2 : i32, i32
  }
  func.func @transform_1(%arg0: i32, %arg1: i32, %arg2: i32) -> (i32, i32) {
    %c0_i32 = arith.constant 0 : i32
    return %arg2, %arg1 : i32, i32
  }
  func.func @transform_2(%arg0: i32, %arg1: i32, %arg2: i32) -> (i32, i32) {
    %c0_i32 = arith.constant 0 : i32
    return %arg0, %arg1 : i32, i32
  }
}

</mosaic_0001>

<bundles_post_ra>
// kernel: tpu_custom_call.1
= control target key start
LH: loop header
LB: loop body
LE: loop exit
PB: predicated region body
PF: predicated region fallthrough
CT: control target
= control target key end

     0   :  { %7 = vsyncpa [#allocation4], 0  ;;  %s329_s0 = inlined_call_operand.hbm [shape: bf16[16,32], index: 0, kind: input, shape index: {}]   ;;  %s330_s1 = inlined_call_operand.hbm [shape: bf16[32,32], index: 1, kind: input, shape index: {}]   ;;  %s331_s2 = inlined_call_operand.hbm [shape: bf16[16,32], index: 2, kind: output, shape index: {}]  }
   0x1   :  { %8 = vsyncpa [#allocation7], 0 }
   0x2   :  { %9 = vsyncpa [#allocation5], 0  ;;  %s257_s9 = smov [#allocation3]   ;;  %s185_s13 = scalar_lea.hbm %s329_s0, 128 }
   0x3   :  { %s15_s10 = sshll.u32 %s257_s9, 4  ;;  %p186_p0 = scmp.ne.s32.totalorder %s329_s0, %s185_s13  ;;  %s16_s10 = int_to_ptr.vmem [resolvable:$true] %s15_s10 }
   0x4   :  { %p189_p1 = scmp.lt.u32.totalorder %s185_s13, %s329_s0 }
   0x6   :  { %p191_p2 = pnand %p189_p1, %p186_p0 }
   0x8   :  { %194 = shalt.err (!%p191_p2)
}
   0x9   :  { %s195_s18 = scalar_lea.vmem %s16_s10, 128  ;;  %p200_p4 = scmp.lt.s32.totalorder %s16_s10, %s16_s10 }
   0xa   :  { %p196_p3 = scmp.ne.s32.totalorder %s16_s10, %s195_s18  ;;  %p201_p5 = scmp.lt.s32.totalorder %s195_s18, %s195_s18 }
   0xc   :  { %p202_p6 = por %p201_p5, %p200_p4 }
   0xe   :  { %p203_p7 = pnand %p202_p6, %p196_p3 }
  0x10   :  { %206 = shalt.err (!%p203_p7)
}
  0x11   :  { %s258_s19 = smov 64   ;;  %s259_s20 = smov 4  }
  0x12   :  { %21 = dma.hbm_to_vmem [thread:$0]  %s329_s0, 128, %s16_s10, [#allocation4], %s258_s19, %s258_s19, %s259_s20  }
  0x13   :  { %s260_s23 = smov [#allocation6]   ;;  %s207_s27 = scalar_lea.hbm %s330_s1, 256 }
  0x14   :  { %s27_s24 = sshll.u32 %s260_s23, 4  ;;  %p208_p8 = scmp.ne.s32.totalorder %s330_s1, %s207_s27  ;;  %s28_s24 = int_to_ptr.vmem [resolvable:$true] %s27_s24 }
  0x15   :  { %p211_p9 = scmp.lt.u32.totalorder %s207_s27, %s330_s1 }
  0x17   :  { %p213_p10 = pnand %p211_p9, %p208_p8 }
  0x19   :  { %216 = shalt.err (!%p213_p10)
}
  0x1a   :  { %s217_s4 = scalar_lea.vmem %s28_s24, 256  ;;  %p222_p12 = scmp.lt.s32.totalorder %s28_s24, %s28_s24 }
  0x1b   :  { %p218_p11 = scmp.ne.s32.totalorder %s28_s24, %s217_s4  ;;  %p223_p13 = scmp.lt.s32.totalorder %s217_s4, %s217_s4 }
  0x1d   :  { %p224_p0 = por %p223_p13, %p222_p12 }
  0x1f   :  { %p225_p1 = pnand %p224_p0, %p218_p11 }
  0x21   :  { %228 = shalt.err (!%p225_p1)
}
  0x22   :  { %33 = dma.hbm_to_vmem [thread:$0]  %s330_s1, 256, %s28_s24, [#allocation7], %s258_s19, %s258_s19, %s259_s20  }
  0x23   :  { %251 = dma.done.wait [#allocation4], 128  }
  0x24   :  { %252 = vsyncadd [#allocation4], 4294967168 }
  0x25   :  { %253 = dma.done.wait [#allocation7], 256  }
  0x26   :  { %254 = vsyncadd [#allocation7], 4294967040  ;;  %vm45_vm0 = vcmask 261120   ;;  %v261_v0 = vmov 0.0   ;;  %vm262_vm1 = vmmov 0   ;;  %v182_v1 = vld [vmem:[#allocation6] sm:$0xff]  }
  0x27   :  { %167 = vmatprep.subr.bf16.mxu0 %v261_v0  ;;  %171 = vmatprep.mubr.msk.bf16.mxu0 %vm262_vm1, %v261_v0  ;;  %46 = vst.msk [vmem:[#allocation2] sm:$0xff] %vm45_vm0, %v261_v0  ;;  %47 = vst.msk [vmem:[#allocation2 + $0x8] sm:$0xff] %vm45_vm0, %v261_v0  ;;  %v183_v2 = vld [vmem:[#allocation6 + $0x8] sm:$0xff]   ;;  %v184_v3 = vld [vmem:[#allocation3] sm:$0xff]   ;;  %vm135_vm2 = vcmask 257024   ;;  %s263_s1 = smov [#allocation8]  }
  0x28   :  { %168 = vmatpush3.bf16.msra.mxu0 %v182_v1  ;;  %s143_s6 = sshll.u32 %s263_s1, 4  ;;  %s144_s6 = int_to_ptr.vmem [resolvable:$true] %s143_s6 }
  0x29   :  { %169 = vmatprep.subr.bf16.mxu0 %v261_v0  ;;  %s229_s7 = scalar_lea.vmem %s144_s6, 128  ;;  %p234_p3 = scmp.lt.s32.totalorder %s144_s6, %s144_s6 }
  0x2a   :  { %p230_p2 = scmp.ne.s32.totalorder %s144_s6, %s229_s7  ;;  %p235_p4 = scmp.lt.s32.totalorder %s229_s7, %s229_s7 }
  0x2c   :  { %170 = vmatpush3.bf16.msra.mxu0 %v183_v2  ;;  %p236_p5 = por %p235_p4, %p234_p3 }
  0x2e   :  { %v48_v4 = vld [vmem:[#allocation2] sm:$0xff]  ;;  %v49_v6 = vld [vmem:[#allocation2 + $0x8] sm:$0xff]  ;;  %p237_p6 = pnand %p236_p5, %p230_p2 }
  0x2f   :  { %172 = vmatmul.mubr.msk.bf16.vlgmr.msra.gmra.mrb[0].mxu0 %vm45_vm0, %v184_v3 }
 0x102   :  { %v111_v5 = vpop.f32.mrb[0].mxu0 }
 0x103   :  { %v118_v7 = vadd.f32 %v111_v5, %v48_v4  ;;  %v173_v8 = vpop.f32.mrb[1].mxu0 }
 0x104   :  { %v114_v9 = vpop.f32.mrb[2].mxu0 }
 0x105   :  { %120 = vst.msk [vmem:[#allocation2] sm:$0xff] %vm45_vm0, %v118_v7  ;;  %v119_v10 = vadd.f32 %v114_v9, %v49_v6  ;;  %v174_v11 = vpop.f32.mrb[3].mxu0 }
 0x107   :  { %121 = vst.msk [vmem:[#allocation2 + $0x8] sm:$0xff] %vm45_vm0, %v119_v10 }
 0x10c   :  { %v125_v12 = vld [vmem:[#allocation2] sm:$0xff] }
 0x10d   :  { %v162_v13 = vpack.c.bf16 %v125_v12, %v125_v12 }
 0x10e   :  { %v126_v14 = vld [vmem:[#allocation2 + $0x8] sm:$0xff] }
 0x10f   :  { %v163_v15 = vpack.c.bf16 %v126_v14, %v126_v14  ;;  %136 = vst.msk [vmem:[#allocation8] sm:$0xf] %vm135_vm2, %v162_v13 }
 0x111   :  { %137 = vst.msk [vmem:[#allocation8 + $0x4] sm:$0xf] %vm135_vm2, %v163_v15 }
 0x112   :  { %240 = shalt.err (!%p237_p6)
}
 0x113   :  { %s241_s10 = scalar_lea.hbm %s331_s2, 128 }
 0x114   :  { %p242_p7 = scmp.ne.s32.totalorder %s331_s2, %s241_s10  ;;  %p245_p8 = scmp.lt.u32.totalorder %s241_s10, %s331_s2 }
 0x116   :  { %p247_p9 = pnand %p245_p8, %p242_p7 }
 0x118   :  { %250 = shalt.err (!%p247_p9)
}
 0x119   :  { %149 = dma.vmem_to_hbm [thread:$0]  %s144_s6, 128, %s331_s2, [#allocation5], %s258_s19, %s258_s19, %s259_s20  }
 0x11a   :  { %255 = dma.done.wait [#allocation5], 128  }
 0x11b   :  { %256 = vsyncadd [#allocation5], 4294967168 }
 0x11c   :  { %153 = vsyncpa [#allocation4], 1 }
 0x11d   :  { %154 = vsyncpa [#allocation7], 1 }
 0x11e   :  { %155 = vsyncpa [#allocation5], 1 }

</bundles_post_ra>
